<compile_context>
chip_gen: v5e
topology: v5e:2x2
jax: 0.10.0
libtpu: 0.0.40
codegen_flags: <defaults>
</compile_context>

<pallas_src>
import functools

import jax
import jax.numpy as jnp
import numpy as np
from jax import lax
from jax.experimental import pallas as pl
from jax.experimental.pallas import tpu as pltpu


def _round_up(x, m):
    return (x + m - 1) // m * m


def _pick_tile_hw(H, W, target_elems):
    """Largest k*W (k divides H) <= target that is lane-legal (mult of 128 or == HW)."""
    candidates = [k * W for k in range(1, H + 1)
                  if H % k == 0 and ((k * W) % 128 == 0 or k == H)]
    fitting = [c for c in candidates if c <= target_elems]
    return max(fitting) if fitting else min(candidates)


def _pifu_kernel(points_ref, calib_ref, feat_ref, out_ref, xy_ref, *,
                 H, W, rows_per_tile):
    """One (batch, N-tile, HW-tile) grid step.

    points_ref: (1, 3, TN)   VMEM f32
    calib_ref : (B, 12)      SMEM f32 (row-major flattened [3,4] calib)
    feat_ref  : (1, C, THW)  VMEM compute dtype (bf16 by default)
    out_ref   : (1, C, TN)   VMEM f32, revisited across the HW reduction axis
    xy_ref    : (2, TN)      VMEM f32 scratch (projected pixel coordinates)
    """
    b = pl.program_id(0)
    hw_step = pl.program_id(2)

    # ---- projection depends only on (b, n): compute once per (b, n) block ----
    @pl.when(hw_step == 0)
    def _project():
        pts = points_ref[0]                   # (3, TN)
        px = pts[0:1, :]
        py = pts[1:2, :]
        pz = pts[2:3, :]

        def cal(r, c):                        # scalar f32 from SMEM
            return calib_ref[b, 4 * r + c]

        u = cal(0, 0) * px + cal(0, 1) * py + cal(0, 2) * pz + cal(0, 3)
        v = cal(1, 0) * px + cal(1, 1) * py + cal(1, 2) * pz + cal(1, 3)
        # continuous pixel coordinates (align_corners=True)
        xy_ref[0:1, :] = (u + 1.0) * (0.5 * (W - 1))
        xy_ref[1:2, :] = (v + 1.0) * (0.5 * (H - 1))

    x = xy_ref[0:1, :]                        # (1, TN)
    y = xy_ref[1:2, :]                        # (1, TN)

    # ---- separable bilinear tent weights (zeros padding behaviour) ----
    col = lax.broadcasted_iota(jnp.int32, (W, 1), 0).astype(jnp.float32)
    wx = jnp.maximum(0.0, 1.0 - jnp.abs(col - x))                 # (W, TN)
    row0 = (hw_step * rows_per_tile).astype(jnp.float32)
    row = row0 + lax.broadcasted_iota(
        jnp.int32, (rows_per_tile, 1), 0).astype(jnp.float32)
    wy = jnp.maximum(0.0, 1.0 - jnp.abs(row - y))                 # (k, TN)
    wmat = (wy[:, None, :] * wx[None, :, :]).reshape(rows_per_tile * W, -1)

    # ---- MXU contraction, f32 accumulation into the revisited output block ----
    contrib = jnp.dot(feat_ref[0], wmat.astype(feat_ref.dtype),
                      preferred_element_type=jnp.float32)         # (C, TN)

    @pl.when(hw_step == 0)
    def _first():
        out_ref[0] = contrib

    @pl.when(hw_step != 0)
    def _accumulate():
        out_ref[0] = out_ref[0] + contrib


def base_pifu_forward(points, images, calibs, transforms=None, *,
                      tile_n=512, tile_hw=None, compute_dtype=jnp.bfloat16):
    """Pallas equivalent of BasePIFuNet.forward (orthogonal projection mode).

    args:
        points: [B, 3, N] float32 world-space points
        images: [B, C, H, W] float32 image features
        calibs: [B, 3, 4] float32 projection matrices
    return:
        [B, C, N] float32 sampled features
    """
    # TODO(synk): `transforms` (screen-space affine) and 'perspective' mode
    #             are not implemented.
    assert transforms is None, "transforms not implemented"
    B, C, H, W = images.shape
    _, _, N = points.shape
    HW = H * W

    if tile_n % 128 != 0:
        raise ValueError("tile_n must be a multiple of 128")

    # --- channel padding to a sublane-friendly multiple of 8 (sliced off below)
    C_pad = _round_up(C, 8)
    feat = images.reshape(B, C, HW)
    if C_pad != C:
        feat = jnp.pad(feat, ((0, 0), (0, C_pad - C), (0, 0)))
    feat = feat.astype(compute_dtype)          # bf16 halves HBM traffic / VMEM

    # --- pad N to a tile multiple instead of rejecting awkward point counts
    n128 = _round_up(N, 128)
    tile_n = min(tile_n, n128)
    if B * (-(-n128 // tile_n)) < 2 and n128 >= 256:
        # keep >= 2 parallel (b, n) blocks so dual-TC chips shard the grid
        tile_n = max(128, (n128 // 2) // 128 * 128)
    N_pad = _round_up(N, tile_n)
    pts = points.astype(jnp.float32)
    if N_pad != N:
        pts = jnp.pad(pts, ((0, 0), (0, 0), (0, N_pad - N)))

    # --- HW tiling: tile_hw = rows_per_tile * W whole image rows
    if tile_hw is None:
        tile_hw = _pick_tile_hw(H, W, target_elems=2048)
    if tile_hw % W != 0 or HW % tile_hw != 0:
        raise ValueError("tile_hw must be a multiple of W that divides H*W")
    if tile_hw % 128 != 0 and tile_hw != HW:
        raise ValueError("tile_hw must be a multiple of 128 (or equal H*W)")
    rows_per_tile = tile_hw // W

    calibs_flat = calibs.reshape(B, 12).astype(jnp.float32)       # -> SMEM

    n_tiles = N_pad // tile_n
    hw_tiles = HW // tile_hw
    grid = (B, n_tiles, hw_tiles)
    itemsize = jnp.dtype(compute_dtype).itemsize

    # Advisory cost estimate for XLA scheduling around this custom call.
    flops = int(B * N_pad * ((2 * C_pad + 3) * HW + 16))
    bytes_accessed = int(
        B * n_tiles * C_pad * HW * itemsize    # feat re-streamed per N tile
        + B * 3 * N_pad * 4                    # points (one fetch per (b, n))
        + B * 12 * 4                           # calib scalars
        + B * C_pad * N_pad * 4)               # output written once per (b, n)
    cost = pl.CostEstimate(flops=flops, transcendentals=0,
                           bytes_accessed=bytes_accessed)

    # VMEM budget from the chosen tiles; clamped <= 48 MiB so the same tiling
    # also fits v7x's 64 MiB (v5e/v6e have 128 MiB of headroom anyway).
    vmem_est = (
        2 * 8 * tile_n * 4                     # points (sublane-padded), x2 buf
        + 2 * C_pad * tile_hw * itemsize       # feat, double buffered
        + 2 * C_pad * tile_n * 4               # output block
        + 8 * tile_n * 4                       # xy scratch
        + tile_hw * tile_n * (8 + itemsize)    # wmat f32 temp + reshape + cast
        + (W + rows_per_tile) * tile_n * 4)    # wx / wy
    vmem_limit = int(max(16 << 20, min(48 << 20, vmem_est + (4 << 20))))

    kernel = functools.partial(_pifu_kernel, H=H, W=W,
                               rows_per_tile=rows_per_tile)
    out = pl.pallas_call(
        kernel,
        out_shape=jax.ShapeDtypeStruct((B, C_pad, N_pad), jnp.float32),
        grid_spec=pltpu.PrefetchScalarGridSpec(
            num_scalar_prefetch=0,
            grid=grid,
            in_specs=[
                pl.BlockSpec((1, 3, tile_n), lambda b, n, h: (b, 0, n)),
                pl.BlockSpec(memory_space=pltpu.MemorySpace.SMEM),
                pl.BlockSpec((1, C_pad, tile_hw), lambda b, n, h: (b, 0, h)),
            ],
            out_specs=pl.BlockSpec((1, C_pad, tile_n), lambda b, n, h: (b, 0, n)),
            scratch_shapes=[pltpu.VMEM((2, tile_n), jnp.float32)],
        ),
        compiler_params=pltpu.CompilerParams(
            dimension_semantics=("parallel", "parallel", "arbitrary"),
            vmem_limit_bytes=vmem_limit),
        cost_estimate=cost,
    )(pts, calibs_flat, feat)
    return out[:, :C, :N]


def _reference_forward(points, images, calibs):
    """Pure-JAX reference of orthogonal() + index() (bilinear grid_sample, zeros pad)."""
    B, C, H, W = images.shape
    rot = calibs[:, :3, :3]
    trans = calibs[:, :3, 3:4]
    xyz = jnp.einsum("bij,bjn->bin", rot, points,
                     precision=jax.lax.Precision.HIGHEST) + trans
    u, v = xyz[:, 0, :], xyz[:, 1, :]
    x = (u + 1.0) * 0.5 * (W - 1)
    y = (v + 1.0) * 0.5 * (H - 1)
    x0 = jnp.floor(x).astype(jnp.int32)
    y0 = jnp.floor(y).astype(jnp.int32)
    x1, y1 = x0 + 1, y0 + 1
    wx1 = x - x0
    wx0 = 1.0 - wx1
    wy1 = y - y0
    wy0 = 1.0 - wy1
    feat = images.reshape(B, C, H * W)

    def gather(xi, yi, w):
        valid = ((xi >= 0) & (xi < W) & (yi >= 0) & (yi < H)).astype(jnp.float32)
        idx = jnp.clip(yi, 0, H - 1) * W + jnp.clip(xi, 0, W - 1)     # (B, N)
        vals = jnp.take_along_axis(feat, idx[:, None, :].repeat(C, axis=1), axis=2)
        return vals * (w * valid)[:, None, :]

    return (gather(x0, y0, wx0 * wy0) + gather(x1, y0, wx1 * wy0)
            + gather(x0, y1, wx0 * wy1) + gather(x1, y1, wx1 * wy1))


if __name__ == "__main__":
    key = jax.random.PRNGKey(0)
    kp, ki, kc = jax.random.split(key, 3)

    B, C, H, W, N = 2, 4, 16, 16, 200       # N deliberately NOT a multiple of 128
    points = jax.random.uniform(kp, (B, 3, N), jnp.float32, minval=-1.0, maxval=1.0)
    images = jax.random.normal(ki, (B, C, H, W), jnp.float32)

    # Deterministic calibration: near-identity rotation/scale + small translation.
    eye = jnp.broadcast_to(jnp.eye(3, dtype=jnp.float32), (B, 3, 3)) * 0.8
    tr = 0.05 * jax.random.normal(kc, (B, 3, 1), jnp.float32)
    calibs = jnp.concatenate([eye, tr], axis=2)                       # [B, 3, 4]

    ref = _reference_forward(points, images, calibs)

    # 1) f32 compute path, explicit small tiles: exercises N padding (200 -> 256),
    #    N tiling (2 tiles) and the HW reduction/accumulation path (2 steps).
    out_f32 = base_pifu_forward(points, images, calibs,
                                tile_n=128, tile_hw=128,
                                compute_dtype=jnp.float32)
    out_f32 = jax.block_until_ready(out_f32)
    np.testing.assert_allclose(np.asarray(out_f32), np.asarray(ref),
                               rtol=2e-4, atol=2e-4)

    # 2) default (production) config: bf16 MXU inputs with f32 accumulation.
    out_bf16 = base_pifu_forward(points, images, calibs)
    out_bf16 = jax.block_until_ready(out_bf16)
    np.testing.assert_allclose(np.asarray(out_bf16), np.asarray(ref),
                               rtol=5e-2, atol=1e-1)

    assert out_f32.shape == (B, C, N) and out_bf16.shape == (B, C, N)
    print("KERNEL_OK")
</pallas_src>

<mosaic_0001>
module attributes {stable_mosaic.version = 11 : i64} {
  func.func @_pifu_kernel(%arg0: i32, %arg1: i32, %arg2: i32, %arg3: memref<1x3x128xf32, #tpu.memory_space<vmem>>, %arg4: memref<2x12xf32, #tpu.memory_space<smem>>, %arg5: memref<1x8x128xf32, #tpu.memory_space<vmem>>, %arg6: memref<1x8x128xf32, #tpu.memory_space<vmem>>, %arg7: memref<2x128xf32, #tpu.memory_space<vmem>>) attributes {dimension_semantics = [#tpu.dimension_semantics<parallel>, #tpu.dimension_semantics<parallel>, #tpu.dimension_semantics<arbitrary>], iteration_bounds = array<i64: 2, 2, 2>, scalar_prefetch = 0 : i64, scratch_operands = 1 : i64, tpu.core_type = #tpu.core_type<tc>, window_params = [{transform_indices = @transform_0, window_bounds = array<i64: 1, 3, 128>}, {transform_indices = @transform_1, window_bounds = array<i64: 2, 12>}, {transform_indices = @transform_2, window_bounds = array<i64: 1, 8, 128>}, {transform_indices = @transform_3, window_bounds = array<i64: 1, 8, 128>}]} {
    %c0_i32 = arith.constant 0 : i32
    %0 = arith.cmpi eq, %arg2, %c0_i32 : i32
    %1 = arith.extui %0 : i1 to i32
    %c0_i32_0 = arith.constant 0 : i32
    %2 = arith.cmpi ne, %1, %c0_i32_0 : i32
    scf.if %2 {
      %c0_14 = arith.constant 0 : index
      %c0_15 = arith.constant 0 : index
      %c0_16 = arith.constant 0 : index
      %44 = vector.load %arg3[%c0_14, %c0_15, %c0_16] : memref<1x3x128xf32, #tpu.memory_space<vmem>>, vector<1x3x128xf32>
      %45 = vector.shape_cast %44 : vector<1x3x128xf32> to vector<3x128xf32>
      %46 = vector.extract_strided_slice %45 {offsets = [0, 0], sizes = [1, 128], strides = [1, 1]} : vector<3x128xf32> to vector<1x128xf32>
      %47 = vector.extract_strided_slice %45 {offsets = [1, 0], sizes = [1, 128], strides = [1, 1]} : vector<3x128xf32> to vector<1x128xf32>
      %48 = vector.extract_strided_slice %45 {offsets = [2, 0], sizes = [1, 128], strides = [1, 1]} : vector<3x128xf32> to vector<1x128xf32>
      %49 = arith.index_cast %arg0 : i32 to index
      %c0_17 = arith.constant 0 : index
      %50 = memref.load %arg4[%49, %c0_17] : memref<2x12xf32, #tpu.memory_space<smem>>
      %51 = vector.broadcast %50 : f32 to vector<1x128xf32>
      %52 = arith.mulf %51, %46 : vector<1x128xf32>
      %53 = arith.index_cast %arg0 : i32 to index
      %c1_18 = arith.constant 1 : index
      %54 = memref.load %arg4[%53, %c1_18] : memref<2x12xf32, #tpu.memory_space<smem>>
      %55 = vector.broadcast %54 : f32 to vector<1x128xf32>
      %56 = arith.mulf %55, %47 : vector<1x128xf32>
      %57 = arith.addf %52, %56 : vector<1x128xf32>
      %58 = arith.index_cast %arg0 : i32 to index
      %c2 = arith.constant 2 : index
      %59 = memref.load %arg4[%58, %c2] : memref<2x12xf32, #tpu.memory_space<smem>>
      %60 = vector.broadcast %59 : f32 to vector<1x128xf32>
      %61 = arith.mulf %60, %48 : vector<1x128xf32>
      %62 = arith.addf %57, %61 : vector<1x128xf32>
      %63 = arith.index_cast %arg0 : i32 to index
      %c3 = arith.constant 3 : index
      %64 = memref.load %arg4[%63, %c3] : memref<2x12xf32, #tpu.memory_space<smem>>
      %65 = vector.broadcast %64 : f32 to vector<1x128xf32>
      %66 = arith.addf %62, %65 : vector<1x128xf32>
      %67 = arith.index_cast %arg0 : i32 to index
      %c4 = arith.constant 4 : index
      %68 = memref.load %arg4[%67, %c4] : memref<2x12xf32, #tpu.memory_space<smem>>
      %69 = vector.broadcast %68 : f32 to vector<1x128xf32>
      %70 = arith.mulf %69, %46 : vector<1x128xf32>
      %71 = arith.index_cast %arg0 : i32 to index
      %c5 = arith.constant 5 : index
      %72 = memref.load %arg4[%71, %c5] : memref<2x12xf32, #tpu.memory_space<smem>>
      %73 = vector.broadcast %72 : f32 to vector<1x128xf32>
      %74 = arith.mulf %73, %47 : vector<1x128xf32>
      %75 = arith.addf %70, %74 : vector<1x128xf32>
      %76 = arith.index_cast %arg0 : i32 to index
      %c6 = arith.constant 6 : index
      %77 = memref.load %arg4[%76, %c6] : memref<2x12xf32, #tpu.memory_space<smem>>
      %78 = vector.broadcast %77 : f32 to vector<1x128xf32>
      %79 = arith.mulf %78, %48 : vector<1x128xf32>
      %80 = arith.addf %75, %79 : vector<1x128xf32>
      %81 = arith.index_cast %arg0 : i32 to index
      %c7 = arith.constant 7 : index
      %82 = memref.load %arg4[%81, %c7] : memref<2x12xf32, #tpu.memory_space<smem>>
      %83 = vector.broadcast %82 : f32 to vector<1x128xf32>
      %84 = arith.addf %80, %83 : vector<1x128xf32>
      %cst_19 = arith.constant 1.000000e+00 : f32
      %85 = vector.broadcast %cst_19 : f32 to vector<1x128xf32>
      %86 = arith.addf %66, %85 : vector<1x128xf32>
      %cst_20 = arith.constant 7.500000e+00 : f32
      %87 = vector.broadcast %cst_20 : f32 to vector<1x128xf32>
      %88 = arith.mulf %86, %87 : vector<1x128xf32>
      %c0_21 = arith.constant 0 : index
      %c0_22 = arith.constant 0 : index
      %89 = vector.load %arg7[%c0_21, %c0_22] : memref<2x128xf32, #tpu.memory_space<vmem>>, vector<1x128xf32>
      tpu.vector_store %arg7[%c0_21, %c0_22], %88 {strides = array<i32>} : memref<2x128xf32, #tpu.memory_space<vmem>>, vector<1x128xf32>,
      %cst_23 = arith.constant 1.000000e+00 : f32
      %90 = vector.broadcast %cst_23 : f32 to vector<1x128xf32>
      %91 = arith.addf %84, %90 : vector<1x128xf32>
      %cst_24 = arith.constant 7.500000e+00 : f32
      %92 = vector.broadcast %cst_24 : f32 to vector<1x128xf32>
      %93 = arith.mulf %91, %92 : vector<1x128xf32>
      %c1_25 = arith.constant 1 : index
      %c0_26 = arith.constant 0 : index
      %94 = vector.load %arg7[%c1_25, %c0_26] : memref<2x128xf32, #tpu.memory_space<vmem>>, vector<1x128xf32>
      tpu.vector_store %arg7[%c1_25, %c0_26], %93 {strides = array<i32>} : memref<2x128xf32, #tpu.memory_space<vmem>>, vector<1x128xf32>,
    } else {
    }
    %c0 = arith.constant 0 : index
    %c0_1 = arith.constant 0 : index
    %3 = vector.load %arg7[%c0, %c0_1] : memref<2x128xf32, #tpu.memory_space<vmem>>, vector<1x128xf32>
    %c1 = arith.constant 1 : index
    %c0_2 = arith.constant 0 : index
    %4 = vector.load %arg7[%c1, %c0_2] : memref<2x128xf32, #tpu.memory_space<vmem>>, vector<1x128xf32>
    %5 = tpu.iota {dimensions = array<i32: 0>} : vector<16x1xi32>
    %6 = arith.sitofp %5 : vector<16x1xi32> to vector<16x1xf32>
    %7 = vector.broadcast %6 : vector<16x1xf32> to vector<16x128xf32>
    %8 = vector.broadcast %3 : vector<1x128xf32> to vector<16x128xf32>
    %9 = arith.subf %7, %8 : vector<16x128xf32>
    %10 = math.absf %9 : vector<16x128xf32>
    %cst = arith.constant 1.000000e+00 : f32
    %11 = vector.broadcast %cst : f32 to vector<16x128xf32>
    %12 = arith.subf %11, %10 : vector<16x128xf32>
    %cst_3 = arith.constant 0.000000e+00 : f32
    %13 = vector.broadcast %cst_3 : f32 to vector<16x128xf32>
    %14 = arith.maximumf %13, %12 : vector<16x128xf32>
    %c8_i32 = arith.constant 8 : i32
    %15 = arith.muli %arg2, %c8_i32 : i32
    %16 = arith.sitofp %15 : i32 to f32
    %17 = tpu.iota {dimensions = array<i32: 0>} : vector<8x1xi32>
    %18 = arith.sitofp %17 : vector<8x1xi32> to vector<8x1xf32>
    %19 = vector.broadcast %16 : f32 to vector<8x1xf32>
    %20 = arith.addf %19, %18 : vector<8x1xf32>
    %21 = vector.broadcast %20 : vector<8x1xf32> to vector<8x128xf32>
    %22 = vector.broadcast %4 : vector<1x128xf32> to vector<8x128xf32>
    %23 = arith.subf %21, %22 : vector<8x128xf32>
    %24 = math.absf %23 : vector<8x128xf32>
    %cst_4 = arith.constant 1.000000e+00 : f32
    %25 = vector.broadcast %cst_4 : f32 to vector<8x128xf32>
    %26 = arith.subf %25, %24 : vector<8x128xf32>
    %cst_5 = arith.constant 0.000000e+00 : f32
    %27 = vector.broadcast %cst_5 : f32 to vector<8x128xf32>
    %28 = arith.maximumf %27, %26 : vector<8x128xf32>
    %29 = vector.shape_cast %28 : vector<8x128xf32> to vector<8x1x128xf32>
    %30 = vector.shape_cast %14 : vector<16x128xf32> to vector<1x16x128xf32>
    %31 = vector.broadcast %29 : vector<8x1x128xf32> to vector<8x16x128xf32>
    %32 = vector.broadcast %30 : vector<1x16x128xf32> to vector<8x16x128xf32>
    %33 = arith.mulf %31, %32 : vector<8x16x128xf32>
    %34 = vector.shape_cast %33 : vector<8x16x128xf32> to vector<128x128xf32>
    %c0_6 = arith.constant 0 : index
    %c0_7 = arith.constant 0 : index
    %c0_8 = arith.constant 0 : index
    %35 = vector.load %arg5[%c0_6, %c0_7, %c0_8] : memref<1x8x128xf32, #tpu.memory_space<vmem>>, vector<1x8x128xf32>
    %36 = vector.shape_cast %35 : vector<1x8x128xf32> to vector<8x128xf32>
    %cst_9 = arith.constant dense<0.000000e+00> : vector<8x128xf32>
    %37 = tpu.matmul %36, %34, %cst_9 {dimension_numbers = #tpu.dot_dimension_numbers<[1], [0], [0], [1], [0, 0, 1, 1], [], []>} : vector<8x128xf32>, vector<128x128xf32>, vector<8x128xf32> -> vector<8x128xf32>
    %c0_i32_10 = arith.constant 0 : i32
    %38 = arith.cmpi eq, %arg2, %c0_i32_10 : i32
    %39 = arith.extui %38 : i1 to i32
    %c0_i32_11 = arith.constant 0 : i32
    %40 = arith.cmpi ne, %39, %c0_i32_11 : i32
    scf.if %40 {
      %c0_14 = arith.constant 0 : index
      %c0_15 = arith.constant 0 : index
      %c0_16 = arith.constant 0 : index
      %44 = vector.load %arg6[%c0_14, %c0_15, %c0_16] : memref<1x8x128xf32, #tpu.memory_space<vmem>>, vector<1x8x128xf32>
      %45 = vector.shape_cast %44 : vector<1x8x128xf32> to vector<8x128xf32>
      %46 = vector.shape_cast %37 : vector<8x128xf32> to vector<1x8x128xf32>
      tpu.vector_store %arg6[%c0_14, %c0_15, %c0_16], %46 {strides = array<i32>} : memref<1x8x128xf32, #tpu.memory_space<vmem>>, vector<1x8x128xf32>,
    } else {
    }
    %c0_i32_12 = arith.constant 0 : i32
    %41 = arith.cmpi ne, %arg2, %c0_i32_12 : i32
    %42 = arith.extui %41 : i1 to i32
    %c0_i32_13 = arith.constant 0 : i32
    %43 = arith.cmpi ne, %42, %c0_i32_13 : i32
    scf.if %43 {
      %c0_14 = arith.constant 0 : index
      %c0_15 = arith.constant 0 : index
      %c0_16 = arith.constant 0 : index
      %44 = vector.load %arg6[%c0_14, %c0_15, %c0_16] : memref<1x8x128xf32, #tpu.memory_space<vmem>>, vector<1x8x128xf32>
      %45 = vector.shape_cast %44 : vector<1x8x128xf32> to vector<8x128xf32>
      %46 = arith.addf %45, %37 : vector<8x128xf32>
      %c0_17 = arith.constant 0 : index
      %c0_18 = arith.constant 0 : index
      %c0_19 = arith.constant 0 : index
      %47 = vector.load %arg6[%c0_17, %c0_18, %c0_19] : memref<1x8x128xf32, #tpu.memory_space<vmem>>, vector<1x8x128xf32>
      %48 = vector.shape_cast %47 : vector<1x8x128xf32> to vector<8x128xf32>
      %49 = vector.shape_cast %46 : vector<8x128xf32> to vector<1x8x128xf32>
      tpu.vector_store %arg6[%c0_17, %c0_18, %c0_19], %49 {strides = array<i32>} : memref<1x8x128xf32, #tpu.memory_space<vmem>>, vector<1x8x128xf32>,
    } else {
    }
    return
  }
  func.func @transform_0(%arg0: i32, %arg1: i32, %arg2: i32) -> (i32, i32, i32) {
    %c0_i32 = arith.constant 0 : i32
    %c0_i32_0 = arith.constant 0 : i32
    return %arg0, %c0_i32, %arg1 : i32, i32, i32
  }
  func.func @transform_1(%arg0: i32, %arg1: i32, %arg2: i32) -> (i32, i32) {
    %c0_i32 = arith.constant 0 : i32
    %c0_i32_0 = arith.constant 0 : i32
    %c0_i32_1 = arith.constant 0 : i32
    return %c0_i32, %c0_i32_0 : i32, i32
  }
  func.func @transform_2(%arg0: i32, %arg1: i32, %arg2: i32) -> (i32, i32, i32) {
    %c0_i32 = arith.constant 0 : i32
    %c0_i32_0 = arith.constant 0 : i32
    return %arg0, %c0_i32, %arg2 : i32, i32, i32
  }
  func.func @transform_3(%arg0: i32, %arg1: i32, %arg2: i32) -> (i32, i32, i32) {
    %c0_i32 = arith.constant 0 : i32
    %c0_i32_0 = arith.constant 0 : i32
    return %arg0, %c0_i32, %arg1 : i32, i32, i32
  }
}

</mosaic_0001>

<bundles_post_ra>
// kernel: tpu_custom_call.1
= control target key start
LH: loop header
LB: loop body
LE: loop exit
PB: predicated region body
PF: predicated region fallthrough
CT: control target
= control target key end

     0   :  { %s1168_s0 = inlined_call_operand.vmem [shape: f32[2,3,256], index: 0, kind: input, shape index: {}]   ;;  %s1169_s1 = inlined_call_operand.vmem [shape: f32[2,12], index: 1, kind: input, shape index: {}]   ;;  %s1170_s2 = inlined_call_operand.hbm [shape: f32[2,8,256], index: 2, kind: input, shape index: {}]   ;;  %s1171_s3 = inlined_call_operand.hbm [shape: f32[2,8,256], index: 3, kind: output, shape index: {}]  }
   0x1   :  { %1189 = sst [smem:[#allocation23_spill]] %s1168_s0 }
   0x2   :  { %1190 = sst [smem:[#allocation24_spill]] %s1169_s1 }
   0x3   :  { %1191 = sst [smem:[#allocation25_spill]] %s1171_s3 }
   0x4   :  { %8 = vsyncpa [#allocation6], 0 }
   0x5   :  { %9 = vsyncpa [#allocation4], 0 }
   0x6   :  { %11 = vsyncpa [#allocation4 + $0x1], 0 }
   0x7   :  { %12 = vsyncpa [#allocation5], 0 }
   0x8   :  { %14 = vsyncpa [#allocation5 + $0x1], 0  ;;  %s918_s12 = smov 0   ;;  %s920_s13 = smov 0  }
   0x9   :  { %s922_s14 = smov 0   ;;  %s924_s15 = smov 0  }
   0xa   :  { %s926_s16 = smov 0   ;;  %s928_s17 = smov 0  }
   0xb   :  { %s930_s18 = smov 0   ;;  %s932_s19 = smov 0  }
   0xc   :  { %s934_s20 = smov 0   ;;  %s936_s21 = smov 0  }
   0xd   :  { %s938_s22 = smov 0   ;;  %s940_s23 = smov 0  }
   0xe   :  { %s942_s24 = smov 0  }
   0xf LB: > { %1192 = sst [smem:[#allocation12_spill]] %s847_s12  ;;  %s553_s25 = sadd.s32 4294967295, %s895_s24   ;;  %s895_s24 = sphi %s942_s24, %s20_s24   ;;  %s891_s23 = sphi %s940_s23, %s1242_s23   ;;  %s887_s22 = sphi %s938_s22, %s1233_s22   ;;  %s883_s21 = sphi %s936_s21, %s1241_s21   ;;  %s879_s20 = sphi %s934_s20, %s1240_s20   ;;  %s875_s19 = sphi %s932_s19, %s1231_s19   ;;  %s871_s18 = sphi %s930_s18, %s1239_s18   ;;  %s867_s17 = sphi %s928_s17, %s1238_s17   ;;  %s863_s16 = sphi %s926_s16, %s1237_s16   ;;  %s859_s15 = sphi %s924_s15, %s1236_s15   ;;  %s855_s14 = sphi %s922_s14, %s1235_s14   ;;  %s851_s13 = sphi %s920_s13, %s1234_s13   ;;  %s847_s12 = sphi %s918_s12, %s1229_s12  }
  0x10   : > { %1193 = sst [smem:[#allocation13_spill]] %s851_s13  ;;  %s554_s26 = sadd.s32 4294967294, %s895_s24  }
  0x11   : > { %1194 = sst [smem:[#allocation14_spill]] %s871_s18  ;;  %p110_p0 = scmp.ne.s32.totalorder %s863_s16, %s859_s15 }
  0x12   : > { %1195 = sst [smem:[#allocation15_spill]] %s875_s19  ;;  %p984_p1 = scmp.eq.s32.totalorder %s553_s25, 0 }
  0x13   : > { %1196 = sst [smem:[#allocation16_spill]] %s879_s20  ;;  %p135_p2 = scmp.ne.s32.totalorder %s855_s14, %s851_s13 }
  0x14   : > { %1197 = sst [smem:[#allocation17_spill]] %s887_s22  ;;  %p136_p3 = scmp.eq.s32.totalorder %s553_s25, 7 }
  0x15   : > { %p992_p4 = por %p984_p1, %p110_p0  ;;  %p141_p5 = scmp.ne.s32.totalorder %s851_s13, %s847_s12 }
  0x16   : > { %p998_p6 = por %p136_p3, %p135_p2  ;;  %p142_p7 = scmp.eq.s32.totalorder %s554_s26, 7 }
  0x17   : > { %s1199_s28 = scalar_select %p992_p4, 1, 0 }
  0x18   : > { %s1201_s29 = scalar_select %p998_p6, 1, 0 }
  0x19   : > { %1200 = sst [smem:[#allocation18_spill]] %s1199_s28  ;;  %p555_p8 = scmp.ge.s32.totalorder %s895_s24, 1 }
  0x1a   : > { %1202 = sst [smem:[#allocation19_spill]] %s1201_s29  ;;  %p149_p9 = scmp.lt.s32.totalorder %s895_s24, 9 }
  0x1b   : > { %p1004_p10 = por %p142_p7, %p141_p5  ;;  %s1206_s1 = sld [smem:[#allocation24_spill]] }
  0x1c   : > { %p1008_p11 = pnand %p555_p8, %p149_p9  ;;  %s897_s8 = smov [#allocation3]  }
  0x1d   : > { %s1203_s30 = scalar_select %p1004_p10, 1, 0 }
  0x1e   : > { %p585_p12 = pneg %p1008_p11  ;;  %s32_s9 = sadd.s32 1, %s883_s21 }
  0x1f   : > { %1204 = sst [smem:[#allocation20_spill]] %s1203_s30  ;;  %s35_s10 = sadd.s32 1, %s887_s22 }
  0x20   : > { %p586_p13 = pnand %p585_p12, %p984_p1  ;;  %p33_p0 = scmp.ge.s32.totalorder %s32_s9, 2 }
  0x21   : > { %s161_s7 = sshll.u32 %s1206_s1, 4  ;;  %s39_s11 = sadd.s32 1, %s891_s23  ;;  %s162_s7 = int_to_ptr.vmem [resolvable:$true] %s161_s7 }
  0x22   : > { %588 = dma.vmem_to_smem (!%p586_p13), %s162_s7, 32, %s897_s8, [#allocation6]  }
  0x23   : > { %s97_s15 = sadd.s32 1, %s867_s17  ;;  %p104_p2 = scmp.ne.s32.totalorder %s867_s17, %s863_s16 }
  0x24   : > { %s1244_s9 = smov (%p33_p0, %s32_s9), 0  ;;  %s1246_s10 = smov (!%p33_p0, %s35_s10), %s887_s22 }
  0x25   : > { %1207 = sst [smem:[#allocation21_spill]] %s1244_s9  ;;  %s93_s25 = ssub.s32 %s883_s21, %s1244_s9 }
  0x26   : > { %p105_p3 = scmp.eq.s32.totalorder %s895_s24, 0  ;;  %p37_p5 = scmp.ge.s32.totalorder %s1246_s10, 2 }
  0x27   : > { %s125_s26 = sadd.s32 1, %s855_s14  ;;  %p598_p8 = scmp.lt.s32.totalorder %s895_s24, 8 }
  0x28   : > { %p1032_p7 = por %p105_p3, %p104_p2  ;;  %s1248_s10 = smov (%p37_p5, %s1246_s10), 0 }
  0x29   : > { %1209 = sst [smem:[#allocation22_spill]] %s1248_s10  ;;  %s1250_s11 = smov (!%p37_p5, %s39_s11), %s891_s23 }
  0x2a   : > { %s121_s6 = ssub.s32 %s887_s22, %s1248_s10  ;;  %s183_s7 = sand.u32 1, %s867_s17  }
  0x2b   : > { %p41_p9 = scmp.ge.s32.totalorder %s1250_s11, 2  ;;  %s558_s8 = sshll.u32 %s183_s7, 3 }
  0x2c   : > { %s559_s1 = sshll.u32 %s891_s23, 1  ;;  %s187_s0 = scalar_lea.vmem [#allocation7], %s558_s8 }
  0x2d   : > { %s1252_s11 = smov (%p41_p9, %s1250_s11), 0  ;;  %s191_s9 = sadd.s32 %s883_s21, %s559_s1 }
  0x2e   : > { %s92_s30 = ssub.s32 %s891_s23, %s1252_s11  ;;  %s560_s12 = sshll.u32 %s191_s9, 3 }
  0x2f   : > { %s94_s3 = sor.u32 %s93_s25, %s92_s30  ;;  %s122_s29 = sor.u32 %s121_s6, %s92_s30 }
  0x30   : > { %p95_p12 = scmp.eq.s32.totalorder %s94_s3, 0  ;;  %p123_p13 = scmp.eq.s32.totalorder %s122_s29, 0 }
  0x31   : > { %s193_s22 = scalar_lea.hbm %s1170_s2, %s560_s12  ;;  %s197_s19 = sshll.u32 %s187_s0, 4  ;;  %s198_s19 = int_to_ptr.vmem [resolvable:$true] %s197_s19 }
  0x32   : > { %s1053_s20 = scalar_select %p95_p12, %s867_s17, %s97_s15  }
  0x33   : > { %s1056_s13 = scalar_select %p123_p13, %s855_s14, %s125_s26  }
  0x34   : > { %s195_s28 = sshll.u32 %s193_s22, 4  ;;  %p590_p0 = pnand %p598_p8, %p1032_p7  ;;  %s196_s28 = int_to_ptr.hbm [resolvable:$true] %s195_s28 }
  0x35   : > { %s184_s1 = scalar_lea.sflag [#allocation4], %s183_s7  ;;  %206 = sbr.rel (%p1008_p11) target bundleno = 335 (0x14f), region = 32 }
  0x36   : > { %592 = dma.hbm_to_vmem [thread:$0]  (!%p590_p0), %s196_s28, 128, %s198_s19, %s184_s1  }
  0x3a   : > { %834 = dma.done.wait (%p984_p1), [#allocation6], 32  }
  0x3b   : > { %836 = vsyncadd (%p984_p1), [#allocation6], 4294967264  ;;  %s213_s3 = sand.u32 1, %s863_s16  }
  0x3c   : > { %s1069_s12 = sshll.u32 %s213_s3, 3  ;;  %s214_s18 = scalar_lea.sflag [#allocation4], %s213_s3 }
  0x3d   : > { %s217_s22 = scalar_lea.vmem [#allocation7], %s1069_s12 }
  0x3e   : > { %838 = dma.done.wait (%p992_p4), %s214_s18, 128  }
  0x3f   : > { %840 = vsyncadd (%p992_p4), %s214_s18, 4294967168 }
  0x40   : > { %223 = sfence }
  0x41   : > { %s1211_s19 = sld [smem:[#allocation13_spill]] }
  0x42   : > { %s1212_s28 = sld [smem:[#allocation16_spill]] }
  0x43   : > { %s1213_s29 = sld [smem:[#allocation15_spill]] }
  0x44   : > { %s1214_s26 = sld [smem:[#allocation23_spill]] }
  0x45   : > { %s1215_s7 = sld [smem:[#allocation14_spill]] }
  0x47   : > { %s1188_s27 = sand.u32 1, %s1211_s19  }
  0x48   : > { %p250_p1 = scmp.lt.s32.totalorder %s1212_s28, 1  ;;  %s564_s30 = sshll.u32 %s1188_s27, 3 }
  0x49   : > { %p252_p11 = scmp.lt.s32.totalorder %s1213_s29, 1  ;;  %s1086_s6 = scalar_lea.vmem [#allocation8], %s564_s30 }
  0x4a   : > { %s1254_s28 = smov (!%p250_p1, %s1212_s28), 1 }
  0x4b   : > { %s1256_s29 = smov (!%p252_p11, %s1213_s29), 1  ;;  %s565_s4 = sshll.u32 %s1254_s28, 1 }
  0x4c   : > { %s255_s9 = sadd.s32 %s565_s4, %s1256_s29  ;;  %p567_p4 = scmp.ne.s32.totalorder %s1215_s7, 0 }
  0x4d   : > { %s566_s10 = sshll.u32 %s255_s9, 2  ;;  %s1216_s8 = sld [smem:[#allocation16_spill]] (!%p567_p4) }
  0x4e   : > { %s257_s5 = scalar_lea.vmem %s1214_s26, %s566_s10  ;;  %261 = sbr.rel (%p567_p4) target bundleno = 111 (0x6f), region = 44 }
  0x53   : > { %s568_s1 = sshll.u32 %s1216_s8, 7  ;;  %v262_v0 = vld [vmem:[%s257_s5] sm:$0x7] }
  0x54   : > { %s264_s0 = sld [smem:[#allocation3 + %s568_s1]]  ;;  %s267_s3 = sadd.s32 1, %s568_s1 }
  0x55   : > { %s268_s18 = sld [smem:[#allocation3 + %s267_s3]]  ;;  %s275_s19 = sadd.s32 2, %s568_s1 }
  0x56   : > { %s276_s28 = sld [smem:[#allocation3 + %s275_s19]]  ;;  %s283_s29 = sadd.s32 3, %s568_s1 }
  0x57   : > { %s284_s4 = sld [smem:[#allocation3 + %s283_s29]]  ;;  %s287_s9 = sadd.s32 4, %s568_s1 }
  0x58   : > { %s288_s27 = sld [smem:[#allocation3 + %s287_s9]]  ;;  %s291_s15 = sadd.s32 5, %s568_s1 }
  0x59   : > { %s292_s30 = sld [smem:[#allocation3 + %s291_s15]]  ;;  %s299_s10 = sadd.s32 6, %s568_s1 }
  0x5a   : > { %v265_v1 = vstv %s264_s0  ;;  %s300_s25 = sld [smem:[#allocation3 + %s299_s10]]  ;;  %s307_s26 = sadd.s32 7, %s568_s1 }
  0x5b   : > { %v269_v2 = vstv %s268_s18  ;;  %v266_v3 = vmul.f32 %v265_v1, %v262_v0  ;;  %s308_s7 = sld [smem:[#allocation3 + %s307_s26]] }
  0x5c   : > { %v270_v4 = vmul.f32 %v269_v2, %v262_v0  ;;  %v277_v5 = vstv %s276_s28 }
  0x5d   : > { %v278_v6 = vmul.f32 %v277_v5, %v262_v0  ;;  %v285_v15 = vstv %s284_s4 }
  0x5e   : > { %v272_v7 = vrot.slane %v270_v4, 1  ;;  %v289_v8 = vstv %s288_s27 }
  0x5f   : > { %v280_v9 = vrot.slane %v278_v6, 2  ;;  %v293_v10 = vstv %s292_s30  ;;  %v290_v12 = vmul.f32 %v289_v8, %v262_v0 }
  0x60   : > { %v274_v11 = vadd.f32 %v272_v7, %v266_v3  ;;  %v294_v13 = vmul.f32 %v293_v10, %v262_v0  ;;  %v301_v14 = vstv %s300_s25 }
  0x61   : > { %v302_v16 = vmul.f32 %v301_v14, %v262_v0  ;;  %v309_v22 = vstv %s308_s7 }
  0x62   : > { %v282_v17 = vadd.f32 %v280_v9, %v274_v11  ;;  %v296_v18 = vrot.slane %v294_v13, 1 }
  0x63   : > { %v304_v19 = vrot.slane %v302_v16, 2 }
  0x64   : > { %v286_v20 = vadd.f32 %v285_v15, %v282_v17  ;;  %v298_v21 = vadd.f32 %v296_v18, %v290_v12 }
  0x66   : > { %v311_v23 = vadd.f32 1.0, %v286_v20  ;;  %v306_v24 = vadd.f32 %v304_v19, %v298_v21 }
  0x68   : > { %v312_v25 = vmul.f32 7.5, %v311_v23  ;;  %v310_v26 = vadd.f32 %v309_v22, %v306_v24 }
  0x6a   : > { %313 = vst [vmem:[#allocation2] sm:$0x1] %v312_v25  ;;  %v314_v27 = vadd.f32 1.0, %v310_v26 }
  0x6c   : > { %v315_v28 = vmul.f32 7.5, %v314_v27 }
  0x6e   : > { %316 = vst [vmem:[#allocation2 + $0x1] sm:$0x1] %v315_v28 }
  0x6f PF: > { %v319_v29 = vlaneseq  ;;  %s1217_s27 = sld [smem:[#allocation14_spill]]  ;;  %v382_v17 = vld [vmem:[%s217_s22] sm:$0xff] }
  0x71   : > { %v320_v30 = vshrl.u32 %v319_v29, 7  ;;  %v706_v33 = vld [vmem:[#allocation2] ss:$0 sm:$0xff] }
  0x73   : > { %v321_v31 = vadd.s32 8, %v320_v30  ;;  %v322_v32 = vcvt.s32.f32 %v320_v30 }
  0x75   : > { %s569_s5 = sshll.u32 %s1217_s27, 3  ;;  %v707_v35 = vld [vmem:[#allocation2 + $0x1] ss:$0 sm:$0xff]  ;;  %v323_v36 = vcvt.s32.f32 %v321_v31  ;;  %v325_v38 = vsub.f32 %v322_v32, %v706_v33 }
  0x76   : > { %s334_s8 = scvt.s32.f32 %s569_s5 }
  0x77   : > { %v326_v39 = vsub.f32 %v323_v36, %v706_v33  ;;  %v327_v41 = vand.u32 2147483647, %v325_v38 }
  0x78   : > { %v335_v34 = vstv %s334_s8 }
  0x79   : > { %v336_v37 = vadd.f32 %v335_v34, %v322_v32  ;;  %v328_v42 = vand.u32 2147483647, %v326_v39  ;;  %v329_v46 = vsub.f32 1.0, %v327_v41 }
  0x7b   : > { %v338_v40 = vsub.f32 %v336_v37, %v707_v35  ;;  %v330_v44 = vsub.f32 1.0, %v328_v42  ;;  %v331_v50 = vmax.f32 %v329_v46, 0.0 }
  0x7d   : > { %v339_v43 = vand.u32 2147483647, %v338_v40  ;;  %v332_v48 = vmax.f32 %v330_v44, 0.0 }
  0x7f   : > { %v340_v45 = vsub.f32 1.0, %v339_v43 }
  0x81   : > { %v341_v47 = vmax.f32 %v340_v45, 0.0 }
  0x83   : > { %v349_v49 = vrot.slane %v341_v47, 7  ;;  %v348_v51 = vrot.slane %v341_v47, 6  ;;  %v347_v54 = vrot.slane %v341_v47, 5  ;;  %v346_v59 = vrot.slane %v341_v47, 4 }
  0x84   : > { %v345_v63 = vrot.slane %v341_v47, 3  ;;  %v344_v3 = vrot.slane %v341_v47, 2  ;;  %v343_v7 = vrot.slane %v341_v47, 1  ;;  %v350_v13 = vperm.slane %v341_v47, 0 }
  0x85   : > { %v357_v52 = vperm.slane %v349_v49, 0  ;;  %v356_v53 = vperm.slane %v348_v51, 0  ;;  %v355_v58 = vperm.slane %v347_v54, 0  ;;  %v354_v62 = vperm.slane %v346_v59, 0 }
  0x86   : > { %v353_v2 = vperm.slane %v345_v63, 0  ;;  %v352_v6 = vperm.slane %v344_v3, 0  ;;  %v351_v10 = vperm.slane %v343_v7, 0  ;;  %v367_v15 = vmul.f32 %v350_v13, %v332_v48 }
  0x87   : > { %v381_v55 = vmul.f32 %v357_v52, %v332_v48  ;;  %v380_v56 = vmul.f32 %v357_v52, %v331_v50  ;;  %v379_v57 = vmul.f32 %v356_v53, %v332_v48  ;;  %v378_v60 = vmul.f32 %v356_v53, %v331_v50 }
  0x88   : > { %v377_v61 = vmul.f32 %v355_v58, %v332_v48  ;;  %v376_v0 = vmul.f32 %v355_v58, %v331_v50  ;;  %v375_v1 = vmul.f32 %v354_v62, %v332_v48  ;;  %v374_v4 = vmul.f32 %v354_v62, %v331_v50 }
  0x89   : > { %383 = vmatpush.msra.mxu0 %v381_v55  ;;  %v373_v5 = vmul.f32 %v353_v2, %v332_v48  ;;  %v372_v8 = vmul.f32 %v353_v2, %v331_v50  ;;  %v371_v9 = vmul.f32 %v352_v6, %v332_v48  ;;  %v370_v11 = vmul.f32 %v352_v6, %v331_v50 }
  0x8a   : > { %v369_v12 = vmul.f32 %v351_v10, %v332_v48  ;;  %v368_v14 = vmul.f32 %v351_v10, %v331_v50  ;;  %v366_v16 = vmul.f32 %v350_v13, %v331_v50 }
  0x8b   : > { %384 = vmatpush.msra.mxu0 %v380_v56 }
  0x8d   : > { %385 = vmatpush.msra.mxu0 %v379_v57 }
  0x8f   : > { %386 = vmatpush.msra.mxu0 %v378_v60 }
  0x91   : > { %387 = vmatpush.msra.mxu0 %v377_v61 }
  0x93   : > { %388 = vmatpush.msra.mxu0 %v376_v0 }
  0x95   : > { %389 = vmatpush.msra.mxu0 %v375_v1 }
  0x97   : > { %390 = vmatpush.msra.mxu0 %v374_v4 }
  0x99   : > { %391 = vmatpush.msra.mxu0 %v373_v5 }
  0x9b   : > { %392 = vmatpush.msra.mxu0 %v372_v8 }
  0x9d   : > { %393 = vmatpush.msra.mxu0 %v371_v9 }
  0x9f   : > { %394 = vmatpush.msra.mxu0 %v370_v11 }
  0xa1   : > { %395 = vmatpush.msra.mxu0 %v369_v12 }
  0xa3   : > { %396 = vmatpush.msra.mxu0 %v368_v14 }
  0xa5   : > { %397 = vmatpush.msra.mxu0 %v367_v15 }
  0xa7   : > { %398 = vmatpush.msra.mxu0 %v366_v16 }
  0xa8   : > { %399 = vmatmul.f32.vlgmr.msra.gmra.mxu0 %v382_v17 }
 0x121   : > { %405 = sbr.rel (%p567_p4) target bundleno = 295 (0x127), region = 48 }
 0x125   : > { %v400_v18 = vpop.f32.mrf.mxu0 }
 0x126   : > { %406 = vst [vmem:[%s1086_s6] sm:$0xff] %v400_v18 }
 0x127 PF: > { %s1218_s1 = sld [smem:[#allocation14_spill]] }
 0x12d   : > { %p571_p2 = scmp.eq.s32.totalorder %s1218_s1, 0 }
 0x12f   : > { %410 = sbr.rel (%p571_p2) target bundleno = 312 (0x138), region = 52 }
 0x134   : > { %v411_v19 = vld [vmem:[%s1086_s6] sm:$0xff] }
 0x135   : > { %v412_v20 = vadd.f32 %v411_v19, %v400_v18 }
 0x137   : > { %413 = vst [vmem:[%s1086_s6] sm:$0xff] %v412_v20 }
 0x138 PF: > { %s1219_s12 = sld [smem:[#allocation16_spill]]  ;;  %s429_s28 = sshll.u32 %s1086_s6, 4  ;;  %s430_s28 = int_to_ptr.vmem [resolvable:$true] %s429_s28 }
 0x139   : > { %s1220_s22 = sld [smem:[#allocation15_spill]] }
 0x13a   : > { %s1221_s0 = sld [smem:[#allocation13_spill]] }
 0x13b   : > { %s1223_s15 = sld [smem:[#allocation25_spill]] }
 0x13e   : > { %s573_s18 = sshll.u32 %s1219_s12, 1 }
 0x13f   : > { %s425_s19 = sadd.s32 %s1220_s22, %s573_s18 }
 0x140   : > { %s574_s29 = sshll.u32 %s425_s19, 3  ;;  %s1225_s26 = sand.u32 1, %s1221_s0  }
 0x141   : > { %s1224_s30 = smov %s1223_s15  ;;  %s427_s10 = scalar_lea.hbm %s1223_s15, %s574_s29 }
 0x142   : > { %s431_s25 = sshll.u32 %s427_s10, 4  ;;  %s415_s7 = scalar_lea.sflag [#allocation5], %s1225_s26  ;;  %s432_s25 = int_to_ptr.hbm [resolvable:$true] %s431_s25 }
 0x143   : > { %s767_s27 = sshra.s32 %s432_s25, 4  ;;  %s773_s6 = scalar_lea.hbm %s1224_s30, 32  ;;  %s768_s27 = int_to_ptr.hbm [resolvable:$true] %s767_s27 }
 0x144   : > { %s769_s5 = scalar_lea.hbm %s768_s27, 8  ;;  %p774_p8 = scmp.lt.s32.totalorder %s768_s27, %s1224_s30 }
 0x145   : > { %p770_p3 = scmp.ne.s32.totalorder %s768_s27, %s769_s5  ;;  %p775_p9 = scmp.lt.s32.totalorder %s773_s6, %s769_s5 }
 0x147   : > { %p771_p5 = pnand %p770_p3, %p998_p6  ;;  %p776_p12 = por %p775_p9, %p774_p8 }
 0x149   : > { %p772_p7 = pneg %p771_p5 }
 0x14b   : > { %p777_p13 = pnand %p776_p12, %p772_p7 }
 0x14d   : > { %780 = shalt.err (!%p777_p13)
}
 0x14e   : > { %583 = dma.vmem_to_hbm [thread:$0]  (%p998_p6), %s430_s28, 128, %s432_s25, %s415_s7  }
 0x14f PF: > { %s1226_s0 = sld [smem:[#allocation12_spill]]  ;;  %p600_p0 = scmp.ge.s32.totalorder %s895_s24, 2 }
 0x151   : > { %p594_p1 = pnand %p600_p0, %p1004_p10 }
 0x153   : > { %p595_p11 = pneg %p594_p1 }
 0x155   : > { %s443_s19 = sand.u32 1, %s1226_s0  }
 0x156   : > { %s444_s29 = scalar_lea.sflag [#allocation5], %s443_s19 }
 0x157   : > { %842 = dma.done.wait (%p595_p11), %s444_s29, 128  }
 0x158   : > { %844 = vsyncadd (%p595_p11), %s444_s29, 4294967168  ;;  %s20_s24 = sadd.s32 1, %s895_s24   ;;  %s1229_s12 = sld [smem:[#allocation13_spill]] }
 0x159   : > { %p1124_p4 = scmp.ge.s32.totalorder %s20_s24, 10   ;;  %s1230_s3 = smov %s1056_s13 }
 0x15a   : > { %s1231_s19 = sld [smem:[#allocation17_spill]]  ;;  %s1234_s13 = smov %s855_s14 }
 0x15b   : > { %s1232_s28 = sld [smem:[#allocation21_spill]]  ;;  %s1235_s14 = smov %s1230_s3 }
 0x15c   : > { %s1233_s22 = sld [smem:[#allocation22_spill]]  ;;  %s1236_s15 = smov %s863_s16 }
 0x15d   : > { %s1237_s16 = smov %s867_s17  ;;  %s1238_s17 = smov %s1053_s20 }
 0x15e   : > { %s1239_s18 = smov %s883_s21  ;;  %s1240_s20 = smov %s891_s23 }
 0x15f   : > { %s1242_s23 = smov %s1252_s11  ;;  %19 = sbr.rel (!%p1124_p4) target bundleno = 15 (0xf), region = 97 }
 0x161   : > { %s1241_s21 = smov %s1232_s28 }
 0x164   :  { %450 = vsyncpa [#allocation4], 1 }
 0x165   :  { %452 = vsyncpa [#allocation4 + $0x1], 1 }
 0x166   :  { %453 = vsyncpa [#allocation5], 1 }
 0x167   :  { %455 = vsyncpa [#allocation5 + $0x1], 1 }
 0x168   :  { %456 = vsyncpa [#allocation6], 1 }
 0x169   :  { %458 = vsyncpa [#allocation6 + $0x1], 1 }

</bundles_post_ra>
